<compile_context>
chip_gen: v5e
topology: v5e:2x2
jax: 0.10.0
libtpu: 0.0.40
codegen_flags: <defaults>
</compile_context>

<pallas_src>
import functools
import math

import jax
import jax.numpy as jnp
from jax.experimental import pallas as pl
from jax.experimental.pallas import tpu as pltpu


def _vmem_budget():
    """Generation-aware scoped-VMEM budget: ~40 MiB on v7x (64 MiB/TC), 64 MiB on v5e/v6e."""
    try:
        cap = int(pltpu.get_tpu_info().vmem_capacity_bytes)
    except Exception:  # interpret mode / older jax
        cap = 128 * 1024 * 1024
    return min(64 * 1024 * 1024, int(cap * 0.625))


_VMEM_LIMIT = _vmem_budget()


def _fit(dim, preferred):
    """Largest tile <= preferred that evenly divides dim (falls back to full dim)."""
    if dim <= preferred:
        return dim
    t = preferred
    while t >= 128 and dim % t:
        t -= 128
    return t if (t >= 128 and dim % t == 0) else dim


# ----------------------------- Pallas kernels -----------------------------

def _make_ln_linear_kernel(activation):
    """LayerNorm fused into the matmul prologue (tk = full K), bias/GELU fused epilogue."""

    def kernel(x_ref, g_ref, bln_ref, w_ref, b_ref, o_ref):
        x = x_ref[...]                                            # (tm, K) f32, resident over j
        mu = jnp.mean(x, axis=-1, keepdims=True)
        var = jnp.mean(jnp.square(x - mu), axis=-1, keepdims=True)
        xn = (x - mu) * jax.lax.rsqrt(var + 1e-5) * g_ref[...] + bln_ref[...]
        acc = jnp.dot(xn.astype(jnp.bfloat16), w_ref[...],
                      preferred_element_type=jnp.float32)         # single MXU pass over K
        out = acc + b_ref[...]
        if activation == 'gelu':
            out = jax.nn.gelu(out, approximate=True)
        o_ref[...] = out.astype(o_ref.dtype)

    return kernel


def _make_linear_kernel(has_residual):
    """K-tiled matmul: bf16 MXU operands, resident f32 accumulator, fused bias/residual."""

    def kernel(*refs):
        if has_residual:
            x_ref, w_ref, b_ref, r_ref, o_ref, acc_ref = refs
        else:
            x_ref, w_ref, b_ref, o_ref, acc_ref = refs
            r_ref = None
        k = pl.program_id(2)

        @pl.when(k == 0)
        def _():
            acc_ref[...] = jnp.zeros_like(acc_ref)

        acc_ref[...] += jnp.dot(x_ref[...], w_ref[...],
                                preferred_element_type=jnp.float32)

        @pl.when(k == pl.num_programs(2) - 1)
        def _():
            out = acc_ref[...] + b_ref[...]          # f32 epilogue
            if r_ref is not None:
                out = out + r_ref[...]               # fused residual add
            o_ref[...] = out.astype(o_ref.dtype)

    return kernel


def _flash_attn_kernel(q_ref, k_ref, v_ref, bias_ref, o_ref, m_sc, l_sc, acc_sc, *, scale):
    # grid = (B, nH, S//tq, S//tk); this instance handles one (batch, head, q-tile).
    # q_ref: (1, tq, dH) bf16; k_ref/v_ref: (1, tk, dH) bf16; bias_ref: (1, 1, tk) f32.
    # scratch: m_sc/l_sc (tq, 1) f32, acc_sc (tq, dH) f32 -- written once per kv step.
    ki = pl.program_id(3)

    @pl.when(ki == 0)
    def _():
        m_sc[...] = jnp.full_like(m_sc, -jnp.inf)
        l_sc[...] = jnp.zeros_like(l_sc)
        acc_sc[...] = jnp.zeros_like(acc_sc)

    q = q_ref[0]                                                  # (tq, dH)
    k = k_ref[0]                                                  # (tk, dH)
    v = v_ref[0]                                                  # (tk, dH)
    bias = bias_ref[0]                                            # (1, tk) -> bcast over rows

    s = jax.lax.dot_general(q, k, (((1,), (1,)), ((), ())),
                            preferred_element_type=jnp.float32)   # (tq, tk) f32
    s = s * scale + bias

    m_prev = m_sc[...]
    m_new = jnp.maximum(m_prev, jnp.max(s, axis=-1, keepdims=True))
    alpha = jnp.exp(m_prev - m_new)
    p = jnp.exp(s - m_new)                                        # unnormalized probs
    l_sc[...] = alpha * l_sc[...] + jnp.sum(p, axis=-1, keepdims=True)
    m_sc[...] = m_new
    acc_sc[...] = alpha * acc_sc[...] + jnp.dot(
        p.astype(jnp.bfloat16), v, preferred_element_type=jnp.float32)

    @pl.when(ki == pl.num_programs(3) - 1)
    def _():
        l = l_sc[...]
        inv = pl.reciprocal(l, approx=True)                       # EUP, deferred normalization
        out = acc_sc[...] * inv
        # guard fully-masked rows (l == 0) so no NaN/inf leaks into the hidden state
        o_ref[0] = jnp.where(l > 0.0, out, 0.0).astype(o_ref.dtype)   # one lane-dense store


# ----------------------------- wrappers -----------------------------------

def pallas_ln_linear(x2d, gamma, beta, w, b, activation=None,
                     out_dtype=jnp.bfloat16, tm=512, tn=512):
    """LayerNorm + Linear (+GELU) fused; requires full K per tile (K = H for ESM sizes)."""
    M, K = x2d.shape
    N = w.shape[1]
    tm, tn = _fit(M, tm), _fit(N, tn)
    grid = (M // tm, N // tn)
    w_bf = w if w.dtype == jnp.bfloat16 else w.astype(jnp.bfloat16)
    return pl.pallas_call(
        _make_ln_linear_kernel(activation),
        out_shape=jax.ShapeDtypeStruct((M, N), out_dtype),
        grid=grid,
        in_specs=[
            pl.BlockSpec((tm, K), lambda i, j: (i, 0)),   # x: j-independent -> resident over j
            pl.BlockSpec((1, K), lambda i, j: (0, 0)),    # LN gamma
            pl.BlockSpec((1, K), lambda i, j: (0, 0)),    # LN beta
            pl.BlockSpec((K, tn), lambda i, j: (0, j)),   # weight, full K
            pl.BlockSpec((1, tn), lambda i, j: (0, j)),   # bias
        ],
        out_specs=pl.BlockSpec((tm, tn), lambda i, j: (i, j)),
        compiler_params=pltpu.CompilerParams(
            dimension_semantics=("parallel", "parallel"),
            vmem_limit_bytes=_VMEM_LIMIT),
    )(x2d, gamma.reshape(1, K), beta.reshape(1, K), w_bf,
      b.reshape(1, N).astype(jnp.float32))


def pallas_linear(x2d, w, b, residual=None, out_dtype=jnp.float32,
                  tm=512, tn=512, tk=1024):
    """Tiled matmul with K-last grid, resident f32 accumulator, fused bias/residual."""
    M, K = x2d.shape
    N = w.shape[1]
    tm, tn, tk = _fit(M, tm), _fit(N, tn), _fit(K, tk)
    grid = (M // tm, N // tn, K // tk)

    x_bf = x2d if x2d.dtype == jnp.bfloat16 else x2d.astype(jnp.bfloat16)
    w_bf = w if w.dtype == jnp.bfloat16 else w.astype(jnp.bfloat16)

    in_specs = [
        pl.BlockSpec((tm, tk), lambda i, j, k: (i, k)),
        pl.BlockSpec((tk, tn), lambda i, j, k: (k, j)),
        pl.BlockSpec((1, tn), lambda i, j, k: (0, j)),   # bias: k-independent, stays resident
    ]
    args = [x_bf, w_bf, b.reshape(1, N).astype(jnp.float32)]
    if residual is not None:
        in_specs.append(pl.BlockSpec((tm, tn), lambda i, j, k: (i, j)))
        args.append(residual)

    return pl.pallas_call(
        _make_linear_kernel(residual is not None),
        out_shape=jax.ShapeDtypeStruct((M, N), out_dtype),
        grid=grid,
        in_specs=in_specs,
        out_specs=pl.BlockSpec((tm, tn), lambda i, j, k: (i, j)),
        scratch_shapes=[pltpu.VMEM((tm, tn), jnp.float32)],
        compiler_params=pltpu.CompilerParams(
            dimension_semantics=("parallel", "parallel", "arbitrary"),
            vmem_limit_bytes=_VMEM_LIMIT),
    )(*args)


def pallas_flash_attention(qkv3, bias, nH, tq=256, tk=256):
    """Flash attention over a combined (B, S, 3H) QKV slab.

    The slab is passed three times with column-blocked BlockSpecs so each grid step
    only DMAs the dH-wide Q/K/V columns of its head (no 3H over-fetch, no in-kernel
    head slicing).  Heads are a parallel grid axis.
    """
    B, S, H3 = qkv3.shape
    H = H3 // 3
    dH = H // nH
    tq, tk = _fit(S, tq), _fit(S, tk)
    grid = (B, nH, S // tq, S // tk)
    kern = functools.partial(_flash_attn_kernel, scale=1.0 / math.sqrt(dH))
    return pl.pallas_call(
        kern,
        out_shape=jax.ShapeDtypeStruct((B, S, H), jnp.bfloat16),
        grid=grid,
        in_specs=[
            pl.BlockSpec((1, tq, dH), lambda b, h, qi, ki: (b, qi, h)),            # Q[h]
            pl.BlockSpec((1, tk, dH), lambda b, h, qi, ki: (b, ki, nH + h)),       # K[h]
            pl.BlockSpec((1, tk, dH), lambda b, h, qi, ki: (b, ki, 2 * nH + h)),   # V[h]
            pl.BlockSpec((1, 1, tk), lambda b, h, qi, ki: (b, 0, ki)),             # key mask
        ],
        out_specs=pl.BlockSpec((1, tq, dH), lambda b, h, qi, ki: (b, qi, h)),
        scratch_shapes=[
            pltpu.VMEM((tq, 1), jnp.float32),    # running max
            pltpu.VMEM((tq, 1), jnp.float32),    # running sum
            pltpu.VMEM((tq, dH), jnp.float32),   # output accumulator
        ],
        compiler_params=pltpu.CompilerParams(
            dimension_semantics=("parallel", "parallel", "parallel", "arbitrary"),
            vmem_limit_bytes=_VMEM_LIMIT),
    )(qkv3, qkv3, qkv3, bias)


# ----------------------------- model --------------------------------------

def init_params(key, vocab, max_len, H, nH, FF, L, num_classes):
    ks = iter(jax.random.split(key, 8 + 8 * L))
    nrm = lambda k, shape, scale: jax.random.normal(k, shape, jnp.float32) * scale
    bf = lambda x: x.astype(jnp.bfloat16)     # MXU weights stored in bf16
    params = {
        'tok_emb': nrm(next(ks), (vocab, H), 0.02),
        'pos_emb': nrm(next(ks), (max_len, H), 0.02),
        'lnf_g': jnp.ones((H,), jnp.float32),
        'lnf_b': jnp.zeros((H,), jnp.float32),
        'cls_w': nrm(next(ks), (H, num_classes), 1.0 / math.sqrt(H)),
        'cls_b': jnp.zeros((num_classes,), jnp.float32),
        'nH': nH,
        'layers': [],
    }
    for _ in range(L):
        params['layers'].append({
            'ln1_g': jnp.ones((H,), jnp.float32),
            'ln1_b': jnp.zeros((H,), jnp.float32),
            'w_qkv': bf(nrm(next(ks), (H, 3 * H), 1.0 / math.sqrt(H))),
            'b_qkv': jnp.zeros((3 * H,), jnp.float32),
            'w_o': bf(nrm(next(ks), (H, H), 1.0 / math.sqrt(H))),
            'b_o': jnp.zeros((H,), jnp.float32),
            'ln2_g': jnp.ones((H,), jnp.float32),
            'ln2_b': jnp.zeros((H,), jnp.float32),
            'w_ff1': bf(nrm(next(ks), (H, FF), 1.0 / math.sqrt(H))),
            'b_ff1': jnp.zeros((FF,), jnp.float32),
            'w_ff2': bf(nrm(next(ks), (FF, H), 1.0 / math.sqrt(FF))),
            'b_ff2': jnp.zeros((H,), jnp.float32),
        })
    return params


def protein_classifier_forward(params, input_ids, attention_mask):
    B, S = input_ids.shape
    H = params['tok_emb'].shape[1]
    nH = params['nH']

    # --- embeddings (gather is glue, stays in plain JAX) ---
    h = params['tok_emb'][input_ids] + params['pos_emb'][None, :S, :]   # (B, S, H) f32

    # additive attention-mask bias over key positions: (B, 1, S)
    bias = jnp.where(attention_mask > 0, 0.0, -1e9).astype(jnp.float32)[:, None, :]

    h2d = h.reshape(B * S, H)                                           # residual stream, f32

    # --- transformer encoder layers ---
    for layer in params['layers']:
        # LN1 fused into the QKV projection (bf16 slab out, no separate LN pass / cast)
        qkv = pallas_ln_linear(h2d, layer['ln1_g'], layer['ln1_b'],
                               layer['w_qkv'], layer['b_qkv'],
                               out_dtype=jnp.bfloat16)                  # (B*S, 3H) bf16
        attn = pallas_flash_attention(qkv.reshape(B, S, 3 * H), bias, nH)  # (B, S, H) bf16
        # attention output projection with fused bias + residual add
        h2d = pallas_linear(attn.reshape(B * S, H), layer['w_o'], layer['b_o'],
                            residual=h2d)

        # LN2 fused into FF1 (+ fused GELU), bf16 out
        ff = pallas_ln_linear(h2d, layer['ln2_g'], layer['ln2_b'],
                              layer['w_ff1'], layer['b_ff1'],
                              activation='gelu', out_dtype=jnp.bfloat16)
        # second FFN matmul with fused bias + residual add
        h2d = pallas_linear(ff, layer['w_ff2'], layer['b_ff2'], residual=h2d)

    # final encoder LayerNorm is row-wise, and only the CLS row is pooled, so apply it
    # to the B CLS rows only (skips a full (B*S, H) pass); dropout = identity in eval.
    cls = h2d.reshape(B, S, H)[:, 0]                                    # (B, H) f32
    mu = jnp.mean(cls, axis=-1, keepdims=True)
    var = jnp.mean(jnp.square(cls - mu), axis=-1, keepdims=True)
    pooled = (cls - mu) * jax.lax.rsqrt(var + 1e-5) * params['lnf_g'] + params['lnf_b']

    # tiny head (N=num_classes < 128): plain XLA dot (a kernel would be all padding)
    logits = jnp.dot(pooled, params['cls_w']) + params['cls_b']         # (B, num_classes)
    return logits


# ----------------------------- main ----------------------------------------

if __name__ == "__main__":
    B, S = 2, 8             # batch, sequence length
    VOCAB = 33              # ESM-2 vocab size
    H, nH, FF, L = 256, 2, 512, 2   # dH = 128 keeps all blocks lane-dense at demo size
    NUM_CLASSES = 5
    MAX_LEN = 16

    root = jax.random.PRNGKey(0)
    k_params, k_ids = jax.random.split(root, 2)

    params = init_params(k_params, VOCAB, MAX_LEN, H, nH, FF, L, NUM_CLASSES)

    input_ids = jax.random.randint(k_ids, (B, S), 0, VOCAB, dtype=jnp.int32)
    attention_mask = jnp.ones((B, S), dtype=jnp.int32).at[1, 6:].set(0)  # pad tail of seq 1

    logits = protein_classifier_forward(params, input_ids, attention_mask)
    jax.block_until_ready(logits)
    assert logits.shape == (B, NUM_CLASSES)
    assert bool(jnp.all(jnp.isfinite(logits)))
    print("KERNEL_OK")
</pallas_src>

<mosaic_0001>
module attributes {stable_mosaic.version = 11 : i64} {
  func.func @kernel(%arg0: i32, %arg1: i32, %arg2: memref<16x256xf32, #tpu.memory_space<vmem>>, %arg3: memref<1x256xf32, #tpu.memory_space<vmem>>, %arg4: memref<1x256xf32, #tpu.memory_space<vmem>>, %arg5: memref<256x384xbf16, #tpu.memory_space<vmem>>, %arg6: memref<1x384xf32, #tpu.memory_space<vmem>>, %arg7: memref<16x384xbf16, #tpu.memory_space<vmem>>) attributes {dimension_semantics = [#tpu.dimension_semantics<parallel>, #tpu.dimension_semantics<parallel>], iteration_bounds = array<i64: 1, 2>, scalar_prefetch = 0 : i64, scratch_operands = 0 : i64, tpu.core_type = #tpu.core_type<tc>, window_params = [{transform_indices = @transform_0, window_bounds = array<i64: 16, 256>}, {pipeline_mode = #tpu.pipeline_mode<synchronous>, transform_indices = @transform_1, window_bounds = array<i64: 1, 256>}, {pipeline_mode = #tpu.pipeline_mode<synchronous>, transform_indices = @transform_2, window_bounds = array<i64: 1, 256>}, {transform_indices = @transform_3, window_bounds = array<i64: 256, 384>}, {transform_indices = @transform_4, window_bounds = array<i64: 1, 384>}, {transform_indices = @transform_5, window_bounds = array<i64: 16, 384>}]} {
    %c0 = arith.constant 0 : index
    %c0_0 = arith.constant 0 : index
    %0 = vector.load %arg2[%c0, %c0_0] : memref<16x256xf32, #tpu.memory_space<vmem>>, vector<16x256xf32>
    %cst = arith.constant dense<0.000000e+00> : vector<16xf32>
    %1 = vector.multi_reduction <add>, %0, %cst [1] : vector<16x256xf32> to vector<16xf32>
    %2 = vector.shape_cast %1 : vector<16xf32> to vector<16x1xf32>
    %cst_1 = arith.constant 2.560000e+02 : f32
    %3 = vector.broadcast %cst_1 : f32 to vector<16x1xf32>
    %4 = arith.divf %2, %3 : vector<16x1xf32>
    %5 = vector.broadcast %4 : vector<16x1xf32> to vector<16x256xf32>
    %6 = arith.subf %0, %5 : vector<16x256xf32>
    %7 = arith.mulf %6, %6 : vector<16x256xf32>
    %cst_2 = arith.constant dense<0.000000e+00> : vector<16xf32>
    %8 = vector.multi_reduction <add>, %7, %cst_2 [1] : vector<16x256xf32> to vector<16xf32>
    %9 = vector.shape_cast %8 : vector<16xf32> to vector<16x1xf32>
    %cst_3 = arith.constant 2.560000e+02 : f32
    %10 = vector.broadcast %cst_3 : f32 to vector<16x1xf32>
    %11 = arith.divf %9, %10 : vector<16x1xf32>
    %12 = vector.broadcast %4 : vector<16x1xf32> to vector<16x256xf32>
    %13 = arith.subf %0, %12 : vector<16x256xf32>
    %cst_4 = arith.constant 9.99999974E-6 : f32
    %14 = vector.broadcast %cst_4 : f32 to vector<16x1xf32>
    %15 = arith.addf %11, %14 : vector<16x1xf32>
    %16 = math.rsqrt %15 : vector<16x1xf32>
    %17 = vector.broadcast %16 : vector<16x1xf32> to vector<16x256xf32>
    %18 = arith.mulf %13, %17 : vector<16x256xf32>
    %c0_5 = arith.constant 0 : index
    %c0_6 = arith.constant 0 : index
    %19 = vector.load %arg3[%c0_5, %c0_6] : memref<1x256xf32, #tpu.memory_space<vmem>>, vector<1x256xf32>
    %20 = vector.broadcast %19 : vector<1x256xf32> to vector<16x256xf32>
    %21 = arith.mulf %18, %20 : vector<16x256xf32>
    %c0_7 = arith.constant 0 : index
    %c0_8 = arith.constant 0 : index
    %22 = vector.load %arg4[%c0_7, %c0_8] : memref<1x256xf32, #tpu.memory_space<vmem>>, vector<1x256xf32>
    %23 = vector.broadcast %22 : vector<1x256xf32> to vector<16x256xf32>
    %24 = arith.addf %21, %23 : vector<16x256xf32>
    %25 = arith.truncf %24 : vector<16x256xf32> to vector<16x256xbf16>
    %c0_9 = arith.constant 0 : index
    %c0_10 = arith.constant 0 : index
    %26 = vector.load %arg5[%c0_9, %c0_10] : memref<256x384xbf16, #tpu.memory_space<vmem>>, vector<256x384xbf16>
    %cst_11 = arith.constant dense<0.000000e+00> : vector<16x384xf32>
    %27 = tpu.matmul %25, %26, %cst_11 {dimension_numbers = #tpu.dot_dimension_numbers<[1], [0], [0], [1], [0, 0, 1, 1], [], []>} : vector<16x256xbf16>, vector<256x384xbf16>, vector<16x384xf32> -> vector<16x384xf32>
    %c0_12 = arith.constant 0 : index
    %c0_13 = arith.constant 0 : index
    %28 = vector.load %arg6[%c0_12, %c0_13] : memref<1x384xf32, #tpu.memory_space<vmem>>, vector<1x384xf32>
    %29 = vector.broadcast %28 : vector<1x384xf32> to vector<16x384xf32>
    %30 = arith.addf %27, %29 : vector<16x384xf32>
    %31 = arith.truncf %30 : vector<16x384xf32> to vector<16x384xbf16>
    %c0_14 = arith.constant 0 : index
    %c0_15 = arith.constant 0 : index
    %32 = vector.load %arg7[%c0_14, %c0_15] : memref<16x384xbf16, #tpu.memory_space<vmem>>, vector<16x384xbf16>
    tpu.vector_store %arg7[%c0_14, %c0_15], %31 {strides = array<i32>} : memref<16x384xbf16, #tpu.memory_space<vmem>>, vector<16x384xbf16>,
    return
  }
  func.func @transform_0(%arg0: i32, %arg1: i32) -> (i32, i32) {
    %c0_i32 = arith.constant 0 : i32
    %c0_i32_0 = arith.constant 0 : i32
    return %arg0, %c0_i32 : i32, i32
  }
  func.func @transform_1(%arg0: i32, %arg1: i32) -> (i32, i32) {
    %c0_i32 = arith.constant 0 : i32
    %c0_i32_0 = arith.constant 0 : i32
    %c0_i32_1 = arith.constant 0 : i32
    return %c0_i32, %c0_i32_0 : i32, i32
  }
  func.func @transform_2(%arg0: i32, %arg1: i32) -> (i32, i32) {
    %c0_i32 = arith.constant 0 : i32
    %c0_i32_0 = arith.constant 0 : i32
    %c0_i32_1 = arith.constant 0 : i32
    return %c0_i32, %c0_i32_0 : i32, i32
  }
  func.func @transform_3(%arg0: i32, %arg1: i32) -> (i32, i32) {
    %c0_i32 = arith.constant 0 : i32
    %c0_i32_0 = arith.constant 0 : i32
    return %c0_i32, %arg1 : i32, i32
  }
  func.func @transform_4(%arg0: i32, %arg1: i32) -> (i32, i32) {
    %c0_i32 = arith.constant 0 : i32
    %c0_i32_0 = arith.constant 0 : i32
    return %c0_i32, %arg1 : i32, i32
  }
  func.func @transform_5(%arg0: i32, %arg1: i32) -> (i32, i32) {
    %c0_i32 = arith.constant 0 : i32
    return %arg0, %arg1 : i32, i32
  }
}

</mosaic_0001>

<bundles_post_ra>
// kernel: tpu_custom_call.1
= control target key start
LH: loop header
LB: loop body
LE: loop exit
PB: predicated region body
PF: predicated region fallthrough
CT: control target
= control target key end

     0   :  { %s1981_s0 = inlined_call_operand.hbm [shape: f32[16,256], index: 0, kind: input, shape index: {}]   ;;  %s1982_s1 = inlined_call_operand.hbm [shape: f32[1,256], index: 1, kind: input, shape index: {}]   ;;  %s1983_s2 = inlined_call_operand.hbm [shape: f32[1,256], index: 2, kind: input, shape index: {}]   ;;  %s1984_s3 = inlined_call_operand.hbm [shape: bf16[256,768], index: 3, kind: input, shape index: {}]   ;;  %s1985_s4 = inlined_call_operand.hbm [shape: f32[1,768], index: 4, kind: input, shape index: {}]   ;;  %s1986_s5 = inlined_call_operand.hbm [shape: bf16[16,768], index: 5, kind: output, shape index: {}]  }
   0x1   :  { %1993 = sst [smem:[#allocation21_spill]] %s1981_s0 }
   0x2   :  { %1994 = sst [smem:[#allocation22_spill]] %s1982_s1 }
   0x3   :  { %1995 = sst [smem:[#allocation23_spill]] %s1984_s3 }
   0x4   :  { %10 = vsyncpa [#allocation3], 0 }
   0x5   :  { %11 = vsyncpa [#allocation6], 0 }
   0x6   :  { %12 = vsyncpa [#allocation9], 0 }
   0x7   :  { %14 = vsyncpa [#allocation9 + $0x1], 0 }
   0x8   :  { %15 = vsyncpa [#allocation4], 0 }
   0x9   :  { %17 = vsyncpa [#allocation4 + $0x1], 0  ;;  %s1673_s18 = smov 0   ;;  %s1675_s19 = smov 0  }
   0xa   :  { %s1677_s20 = smov 0   ;;  %s1679_s21 = smov 0  }
   0xb   :  { %s1681_s22 = smov 0   ;;  %s1683_s23 = smov 0  }
   0xc LB: > { %1996 = sst [smem:[#allocation16_spill]] %s1609_s18  ;;  %s1704_s24 = sadd.s32 4294967295, %s1629_s23   ;;  %s1629_s23 = sphi %s1683_s23, %s23_s23   ;;  %s1625_s22 = sphi %s1681_s22, %s2021_s22   ;;  %s1621_s21 = sphi %s1679_s21, %s2020_s21   ;;  %s1617_s20 = sphi %s1677_s20, %s2019_s20   ;;  %s1613_s19 = sphi %s1675_s19, %s2018_s19   ;;  %s1609_s18 = sphi %s1673_s18, %s2017_s18  }
   0xd   : > { %1997 = sst [smem:[#allocation17_spill]] %s1629_s23  ;;  %s1015_s25 = sadd.s32 4294967294, %s1629_s23  }
   0xe   : > { %s110_s26 = sadd.s32 1, %s1617_s20  ;;  %p117_p0 = scmp.ne.s32.totalorder %s1617_s20, %s1613_s19 }
   0xf   : > { %p118_p1 = scmp.eq.s32.totalorder %s1629_s23, 0  ;;  %p123_p2 = scmp.ne.s32.totalorder %s1613_s19, %s1609_s18 }
  0x10   : > { %p124_p3 = scmp.eq.s32.totalorder %s1704_s24, 0  ;;  %p175_p4 = scmp.eq.s32.totalorder %s1704_s24, 1 }
  0x11   : > { %p1715_p5 = por %p118_p1, %p117_p0  ;;  %p181_p6 = scmp.eq.s32.totalorder %s1015_s25, 1 }
  0x12   : > { %p1721_p7 = por %p124_p3, %p123_p2  ;;  %p1725_p8 = por %p175_p4, %p117_p0 }
  0x13   : > { %p1729_p9 = por %p181_p6, %p123_p2  ;;  %p1016_p10 = scmp.ge.s32.totalorder %s1629_s23, 1 }
  0x14   : > { %p188_p11 = scmp.lt.s32.totalorder %s1629_s23, 3  ;;  %s2003_s1 = sld [smem:[#allocation22_spill]] }
  0x15   : > { %s2001_s30 = scalar_select %p1729_p9, 1, 0 }
  0x16   : > { %p1738_p12 = pnand %p1016_p10, %p188_p11  ;;  %s1631_s10 = smov [#allocation5]  }
  0x17   : > { %2002 = sst [smem:[#allocation18_spill]] %s2001_s30  ;;  %s220_s11 = sshll.u32 %s1631_s10, 4  ;;  %s221_s11 = int_to_ptr.vmem [resolvable:$true] %s220_s11 }
  0x18   : > { %p1020_p13 = scmp.ge.s32.totalorder %s1629_s23, 2  ;;  %p1294_p0 = pneg %p1738_p12 }
  0x19   : > { %p1318_p1 = scmp.lt.s32.totalorder %s1629_s23, 2  ;;  %s32_s14 = sadd.s32 1, %s1625_s22 }
  0x1a   : > { %s218_s8 = sshll.u32 %s2003_s1, 4  ;;  %p1748_p2 = pnand %p1294_p0, %p124_p3  ;;  %s219_s8 = int_to_ptr.hbm [resolvable:$true] %s218_s8 }
  0x1b   : > { %p1754_p4 = pnand %p1318_p1, %p1715_p5  ;;  %p33_p6 = scmp.ge.s32.totalorder %s32_s14, 2 }
  0x1c   : > { %1300 = dma.hbm_to_vmem [thread:$0]  (!%p1748_p2), %s219_s8, 32, %s221_s11, [#allocation6]  }
  0x1d   : > { %s243_s15 = sand.u32 1, %s1629_s23   ;;  %s2023_s14 = smov (%p33_p6, %s32_s14), 0 }
  0x1e   : > { %2007 = sst [smem:[#allocation19_spill]] %s2023_s14  ;;  %s1992_s16 = sand.u32 1, %s1617_s20  }
  0x1f   : > { %s107_s17 = ssub.s32 %s1625_s22, %s2023_s14  ;;  %s1271_s25 = smul.u32 384, %s1992_s16 }
  0x20   : > { %p108_p10 = scmp.eq.s32.totalorder %s107_s17, 0  ;;  %s1221_s27 = smul.u32 12, %s1625_s22 }
  0x21   : > { %s2009_s3 = sld [smem:[#allocation23_spill]]  ;;  %s247_s30 = scalar_lea.vmem [#allocation8], %s1271_s25 }
  0x22   : > { %s1773_s6 = scalar_select %p108_p10, %s1617_s20, %s110_s26  }
  0x23   : > { %s255_s8 = sshll.u32 %s247_s30, 4  ;;  %s244_s23 = scalar_lea.sflag [#allocation9], %s243_s15  ;;  %s256_s8 = int_to_ptr.vmem [resolvable:$true] %s255_s8 }
  0x24   : > { %2008 = sst [smem:[#allocation20_spill]] %s1773_s6  ;;  %s1632_s18 = smov 384  }
  0x25   : > { %s1633_s14 = smov 192   ;;  %s1634_s16 = smov 12  }
  0x26   : > { %s2010_s0 = sld [smem:[#allocation21_spill]]  ;;  %s1635_s25 = smov [#allocation2]  }
  0x27   : > { %s252_s1 = scalar_lea.hbm %s2009_s3, %s1221_s27  ;;  %s205_s30 = sshll.u32 %s1635_s25, 4  ;;  %s206_s30 = int_to_ptr.vmem [resolvable:$true] %s205_s30 }
  0x28   : > { %s253_s11 = sshll.u32 %s252_s1, 4  ;;  %s1636_s1 = smov 256   ;;  %s254_s11 = int_to_ptr.hbm [resolvable:$true] %s253_s11 }
  0x29   : > { %1307 = dma.hbm_to_vmem [thread:$0]  (!%p1754_p4), %s254_s11, 6144, %s256_s8, %s244_s23, %s1632_s18, %s1633_s14, %s1634_s16  }
  0x2a   : > { %s1637_s27 = smov 16   ;;  %s230_s3 = sshll.u32 %s1983_s2, 4  ;;  %s231_s3 = int_to_ptr.hbm [resolvable:$true] %s230_s3 }
  0x2b   : > { %s1638_s18 = smov [#allocation7]   ;;  %s2011_s16 = sand.u32 1, %s1617_s20  }
  0x2c   : > { %s203_s7 = sshll.u32 %s2010_s0, 4  ;;  %s232_s14 = sshll.u32 %s1638_s18, 4  ;;  %s204_s7 = int_to_ptr.hbm [resolvable:$true] %s203_s7  ;;  %s233_s14 = int_to_ptr.vmem [resolvable:$true] %s232_s14 }
  0x2d   : > { %1297 = dma.hbm_to_vmem [thread:$0]  (!%p1748_p2), %s204_s7, 512, %s206_s30, [#allocation3], %s1636_s1, %s1636_s1, %s1637_s27  }
  0x2e   : > { %s1272_s8 = smul.u32 3, %s2011_s16 }
  0x2f   : > { %1303 = dma.hbm_to_vmem [thread:$0]  (!%p1748_p2), %s231_s3, 32, %s233_s14, [#allocation6]  }
  0x30   : > { %s270_s11 = smul.u32 3, %s1625_s22  ;;  %s269_s26 = scalar_lea.vmem [#allocation10], %s1272_s8 }
  0x31   : > { %s277_s17 = sshll.u32 %s269_s26, 4  ;;  %286 = sbr.rel (%p1738_p12) target bundleno = 504 (0x1f8), region = 40  ;;  %s278_s17 = int_to_ptr.vmem [resolvable:$true] %s277_s17 }
  0x32   : > { %s273_s6 = scalar_lea.hbm %s1985_s4, %s270_s11 }
  0x33   : > { %s275_s7 = sshll.u32 %s273_s6, 4  ;;  %s276_s7 = int_to_ptr.hbm [resolvable:$true] %s275_s7 }
  0x34   : > { %1310 = dma.hbm_to_vmem [thread:$0]  (!%p1754_p4), %s276_s7, 48, %s278_s17, %s244_s23  }
  0x36   : > { %1592 = dma.done.wait (%p124_p3), [#allocation3], 512  }
  0x37   : > { %1594 = vsyncadd (%p124_p3), [#allocation3], 4294966784 }
  0x38   : > { %1596 = dma.done.wait (%p124_p3), [#allocation6], 64  }
  0x39   : > { %1598 = vsyncadd (%p124_p3), [#allocation6], 4294967232  ;;  %s303_s0 = sand.u32 1, %s1704_s24   ;;  %s1810_s3 = sand.u32 1, %s1613_s19  }
  0x3a   : > { %s1273_s23 = smul.u32 384, %s1810_s3  ;;  %s304_s9 = scalar_lea.sflag [#allocation9], %s303_s0 }
  0x3c   : > { %s1813_s12 = scalar_lea.vmem [#allocation8], %s1273_s23 }
  0x3d   : > { %1600 = dma.done.wait (%p1721_p7), %s304_s9, 6192  }
  0x3e   : > { %1602 = vsyncadd (%p1721_p7), %s304_s9, 4294961104  ;;  %v355_v0 = vld [vmem:[#allocation2] sm:$0xff]  ;;  %v356_v1 = vld [vmem:[#allocation2 + $0x8] sm:$0xff]  ;;  %v1639_v6 = vmov 256.0   ;;  %s1274_s24 = smul.u32 3, %s1810_s3  ;;  %s1559_s26 = scalar_lea.hbm %s1986_s5, 48 }
  0x3f   : > { %v359_v2 = vadd.f32 %v356_v1, %v355_v0  ;;  %v357_v3 = vld [vmem:[#allocation2 + $0x10] sm:$0xff]  ;;  %v358_v4 = vld [vmem:[#allocation2 + $0x18] sm:$0xff]  ;;  %1383 = vrcp.f32 %v1639_v6  ;;  %v1112_v10 = vld [vmem:[%s1813_s12 + $0xa8] sm:$0xf]  ;;  %s1275_s13 = smul.u32 24, %s1810_s3 }
  0x40   : > { %v362_v5 = vadd.f32 %v358_v4, %v357_v3  ;;  %v1244_v11 = vld [vmem:[%s1813_s12 + $0xb0] sm:$0xf0]  ;;  %v1208_v12 = vld [vmem:[%s1813_s12 + $0x168] sm:$0xf]  ;;  %v1100_v15 = vld [vmem:[%s1813_s12 + $0x90] sm:$0xf] }
  0x41   : > { %360 = vadd.xlane.f32.xlu0 %v359_v2  ;;  %v1113_v13 = vor.u32 %v1244_v11, %v1112_v10  ;;  %v1268_v14 = vld [vmem:[%s1813_s12 + $0x170] sm:$0xf0]  ;;  %v1241_v16 = vld [vmem:[%s1813_s12 + $0x98] sm:$0xf0]  ;;  %v1196_v18 = vld [vmem:[%s1813_s12 + $0x150] sm:$0xf] }
  0x42   : > { %v1209_v17 = vor.u32 %v1268_v14, %v1208_v12  ;;  %v1265_v19 = vld [vmem:[%s1813_s12 + $0x158] sm:$0xf0]  ;;  %v1101_v20 = vor.u32 %v1241_v16, %v1100_v15  ;;  %v1088_v39 = vld [vmem:[%s1813_s12 + $0x78] sm:$0xf]  ;;  %v1238_v40 = vld [vmem:[%s1813_s12 + $0x80] sm:$0xf0] }
  0x43   : > { %766 = vmatpush.bf16.msra.mxu0 %v1113_v13  ;;  %v1197_v21 = vor.u32 %v1265_v19, %v1196_v18  ;;  %v1184_v41 = vld [vmem:[%s1813_s12 + $0x138] sm:$0xf]  ;;  %v1089_v42 = vor.u32 %v1238_v40, %v1088_v39  ;;  %v1262_v43 = vld [vmem:[%s1813_s12 + $0x140] sm:$0xf0]  ;;  %v1076_v45 = vld [vmem:[%s1813_s12 + $0x60] sm:$0xf] }
  0x44   : > { %780 = vmatpush.bf16.msra.mxu1 %v1209_v17  ;;  %v1185_v44 = vor.u32 %v1262_v43, %v1184_v41  ;;  %v1235_v46 = vld [vmem:[%s1813_s12 + $0x68] sm:$0xf0]  ;;  %v1172_v47 = vld [vmem:[%s1813_s12 + $0x120] sm:$0xf]  ;;  %v1114_v51 = vld [vmem:[%s1813_s12 + $0xb4] sm:$0xf0] }
  0x45   : > { %v1384_v7 = vpop.eup %1383  ;;  %v1077_v48 = vor.u32 %v1235_v46, %v1076_v45  ;;  %v1259_v49 = vld [vmem:[%s1813_s12 + $0x128] sm:$0xf0]  ;;  %v1210_v55 = vld [vmem:[%s1813_s12 + $0x174] sm:$0xf0]  ;;  %v1064_v57 = vld [vmem:[%s1813_s12 + $0x48] sm:$0xf] }
  0x46   : > { %v366_v8 = vmul.f32 256.0, %v1384_v7  ;;  %vm370_vm0 = vweird.f32 %v1384_v7  ;;  %v1243_v50 = vld [vmem:[%s1813_s12 + $0xac] sm:$0xf]  ;;  %v1173_v52 = vor.u32 %v1259_v49, %v1172_v47  ;;  %v1232_v58 = vld [vmem:[%s1813_s12 + $0x50] sm:$0xf0]  ;;  %s317_s28 = scalar_lea.vmem [#allocation10], %s1274_s24 }
  0x47   : > { %767 = vmatpush.bf16.msra.mxu0 %v1101_v20  ;;  %v1117_v53 = vor.u32 %v1243_v50, %v1114_v51  ;;  %v1267_v54 = vld [vmem:[%s1813_s12 + $0x16c] sm:$0xf]  ;;  %v1160_v59 = vld [vmem:[%s1813_s12 + $0x108] sm:$0xf]  ;;  %v1065_v60 = vor.u32 %v1232_v58, %v1064_v57  ;;  %v1256_v61 = vld [vmem:[%s1813_s12 + $0x110] sm:$0xf0] }
  0x48   : > { %v367_v9 = vsub.f32 1.0, %v366_v8  ;;  %781 = vmatpush.bf16.msra.mxu1 %v1197_v21  ;;  %v1213_v56 = vor.u32 %v1267_v54, %v1210_v55  ;;  %v1240_v62 = vld [vmem:[%s1813_s12 + $0x94] sm:$0xf]  ;;  %v1102_v63 = vld [vmem:[%s1813_s12 + $0x9c] sm:$0xf0]  ;;  %s349_s6 = scalar_lea.vmem [#allocation11], %s1275_s13 }
  0x49   : > { %363 = vadd.xlane.f32.xlu0 %v362_v5  ;;  %794 = vmatpush.bf16.msra.mxu2 %v1117_v53  ;;  %v1264_v2 = vld [vmem:[%s1813_s12 + $0x154] sm:$0xf]  ;;  %v1052_v5 = vld [vmem:[%s1813_s12 + $0x30] sm:$0xf]  ;;  %v1229_v6 = vld [vmem:[%s1813_s12 + $0x38] sm:$0xf0] }
  0x4a   : > { %v368_v22 = vmul.f32 %v1384_v7, %v367_v9  ;;  %808 = vmatpush.bf16.msra.mxu3 %v1213_v56  ;;  %v1053_v8 = vor.u32 %v1229_v6, %v1052_v5  ;;  %v1253_v9 = vld [vmem:[%s1813_s12 + $0xf8] sm:$0xf0]  ;;  %v1090_v11 = vld [vmem:[%s1813_s12 + $0x84] sm:$0xf0]  ;;  %v1040_v17 = vld [vmem:[%s1813_s12 + $0x18] sm:$0xf] }
  0x4b   : > { %768 = vmatpush.bf16.msra.mxu0 %v1089_v42  ;;  %v1237_v10 = vld [vmem:[%s1813_s12 + $0x7c] sm:$0xf]  ;;  %v1186_v15 = vld [vmem:[%s1813_s12 + $0x144] sm:$0xf0]  ;;  %v1226_v18 = vld [vmem:[%s1813_s12 + $0x20] sm:$0xf0] }
  0x4c   : > { %v369_v23 = vadd.f32 %v1384_v7, %v368_v22  ;;  %782 = vmatpush.bf16.msra.mxu1 %v1185_v44  ;;  %v1093_v13 = vor.u32 %v1237_v10, %v1090_v11  ;;  %v1261_v14 = vld [vmem:[%s1813_s12 + $0x13c] sm:$0xf]  ;;  %v1136_v19 = vld [vmem:[%s1813_s12 + $0xd8] sm:$0xf]  ;;  %v1041_v20 = vor.u32 %v1226_v18, %v1040_v17  ;;  %v1250_v21 = vld [vmem:[%s1813_s12 + $0xe0] sm:$0xf0] }
  0x4d   : > { %v1189_v16 = vor.u32 %v1261_v14, %v1186_v15  ;;  %v1234_v22 = vld [vmem:[%s1813_s12 + $0x64] sm:$0xf]  ;;  %v1231_v39 = vld [vmem:[%s1813_s12 + $0x4c] sm:$0xf]  ;;  %v1066_v40 = vld [vmem:[%s1813_s12 + $0x54] sm:$0xf0] }
  0x4e   : > { %v1827_v24 = vsel %vm370_vm0, %v1384_v7, %v369_v23  ;;  %v1148_v7 = vld [vmem:[%s1813_s12 + $0xf0] sm:$0xf]  ;;  %v1069_v42 = vor.u32 %v1231_v39, %v1066_v40  ;;  %v1255_v43 = vld [vmem:[%s1813_s12 + $0x10c] sm:$0xf]  ;;  %v1162_v44 = vld [vmem:[%s1813_s12 + $0x114] sm:$0xf0] }
  0x4f   : > { %769 = vmatpush.bf16.msra.mxu0 %v1077_v48  ;;  %v1149_v12 = vor.u32 %v1253_v9, %v1148_v7  ;;  %v1078_v23 = vld [vmem:[%s1813_s12 + $0x6c] sm:$0xf0]  ;;  %v1165_v46 = vor.u32 %v1255_v43, %v1162_v44  ;;  %v1245_v47 = vld [vmem:[%s1813_s12 + $0xb8] sm:$0xf0]  ;;  %v1054_v53 = vld [vmem:[%s1813_s12 + $0x3c] sm:$0xf0] }
  0x50   : > { %783 = vmatpush.bf16.msra.mxu1 %v1173_v52  ;;  %v1120_v45 = vld [vmem:[%s1813_s12 + $0xb0] sm:$0xf]  ;;  %v1269_v49 = vld [vmem:[%s1813_s12 + $0x178] sm:$0xf0]  ;;  %v1228_v52 = vld [vmem:[%s1813_s12 + $0x34] sm:$0xf] }
  0x51   : > { %v1216_v48 = vld [vmem:[%s1813_s12 + $0x170] sm:$0xf]  ;;  %v1121_v50 = vor.u32 %v1245_v47, %v1120_v45  ;;  %v1252_v54 = vld [vmem:[%s1813_s12 + $0xf4] sm:$0xf]  ;;  %v1057_v55 = vor.u32 %v1228_v52, %v1054_v53  ;;  %v1150_v56 = vld [vmem:[%s1813_s12 + $0xfc] sm:$0xf0] }
  0x52   : > { %v1217_v51 = vor.u32 %v1269_v49, %v1216_v48  ;;  %v1108_v57 = vld [vmem:[%s1813_s12 + $0x98] sm:$0xf]  ;;  %v1242_v58 = vld [vmem:[%s1813_s12 + $0xa0] sm:$0xf0]  ;;  %v1096_v5 = vld [vmem:[%s1813_s12 + $0x80] sm:$0xf] }
  0x53   : > { %770 = vmatpush.bf16.msra.mxu0 %v1065_v60  ;;  %v1109_v60 = vor.u32 %v1242_v58, %v1108_v57  ;;  %v1239_v6 = vld [vmem:[%s1813_s12 + $0x88] sm:$0xf0]  ;;  %v1192_v9 = vld [vmem:[%s1813_s12 + $0x140] sm:$0xf]  ;;  %v1222_v11 = vld [vmem:[%s1813_s12 + $0x4] sm:$0xf] }
  0x54   : > { %v1263_v10 = vld [vmem:[%s1813_s12 + $0x148] sm:$0xf0]  ;;  %v1030_v14 = vld [vmem:[%s1813_s12 + $0xc] sm:$0xf0]  ;;  %v1246_v15 = vld [vmem:[%s1813_s12 + $0xc4] sm:$0xf] }
  0x55   : > { %v1033_v18 = vor.u32 %v1222_v11, %v1030_v14  ;;  %v1060_v39 = vld [vmem:[%s1813_s12 + $0x38] sm:$0xf]  ;;  %v1230_v40 = vld [vmem:[%s1813_s12 + $0x40] sm:$0xf0]  ;;  %v1227_v47 = vld [vmem:[%s1813_s12 + $0x28] sm:$0xf0] }
  0x56   : > { %v1254_v43 = vld [vmem:[%s1813_s12 + $0x100] sm:$0xf0]  ;;  %v1061_v44 = vor.u32 %v1230_v40, %v1060_v39  ;;  %v1132_v57 = vld [vmem:[%s1813_s12 + $0xc8] sm:$0xf]  ;;  %v1248_v58 = vld [vmem:[%s1813_s12 + $0xd0] sm:$0xf0] }
  0x57   : > { %771 = vmatpush.bf16.msra.mxu0 %v1053_v8  ;;  %v1097_v8 = vor.u32 %v1239_v6, %v1096_v5  ;;  %v416_v5 = vld [vmem:[#allocation5] sm:$0x3]  ;;  %s1270_s30 = smul.u32 12, %s1621_s21  ;;  %s874_s10 = sshll.u32 %s349_s6, 4  ;;  %s875_s10 = int_to_ptr.vmem [resolvable:$true] %s874_s10 }
  0x58   : > { %v419_v11 = vperm.slane %v416_v5, 1  ;;  %s859_s21 = scalar_lea.sflag [#allocation4], %s1810_s3 }
  0x59   : > { %s873_s15 = scalar_lea.hbm %s1986_s5, %s1270_s30 }
  0x5a   : > { %s876_s18 = sshll.u32 %s873_s15, 4  ;;  %s877_s18 = int_to_ptr.hbm [resolvable:$true] %s876_s18 }
  0x5b   : > { %772 = vmatpush.bf16.msra.mxu0 %v1041_v20  ;;  %v1084_v20 = vld [vmem:[%s1813_s12 + $0x68] sm:$0xf]  ;;  %s1553_s14 = sshra.s32 %s877_s18, 4  ;;  %s1554_s14 = int_to_ptr.hbm [resolvable:$true] %s1553_s14 }
  0x5c   : > { %s1555_s16 = scalar_lea.hbm %s1554_s14, 24  ;;  %p1560_p11 = scmp.lt.s32.totalorder %s1554_s14, %s1986_s5 }
  0x5d   : > { %p1556_p3 = scmp.ne.s32.totalorder %s1554_s14, %s1555_s16  ;;  %p1561_p12 = scmp.lt.s32.totalorder %s1559_s26, %s1555_s16 }
  0x5f   : > { %p1557_p5 = pnand %p1556_p3, %p1725_p8  ;;  %p1562_p0 = por %p1561_p12, %p1560_p11 }
  0x61   : > { %p1558_p7 = pneg %p1557_p5 }
  0x63   : > { %p1563_p1 = pnand %p1562_p0, %p1558_p7 }
  0xb4   : > { %v361_v25 = vpop.xlane.xlu0 %360 }
  0xb5   : > { %v372_v26 = vmul.f32 %v1827_v24, %v361_v25  ;;  %v1137_v25 = vor.u32 %v1250_v21, %v1136_v19  ;;  %v1236_v21 = vld [vmem:[%s1813_s12 + $0x70] sm:$0xf0] }
  0xb7   : > { %v1830_v27 = vsub.f32 %v355_v0, %v372_v26  ;;  %v1832_v28 = vsub.f32 %v356_v1, %v372_v26  ;;  %v1161_v0 = vor.u32 %v1256_v61, %v1160_v59  ;;  %v1105_v1 = vor.u32 %v1240_v62, %v1102_v63  ;;  %v1204_v61 = vld [vmem:[%s1813_s12 + $0x158] sm:$0xf]  ;;  %v1266_v62 = vld [vmem:[%s1813_s12 + $0x160] sm:$0xf0] }
  0xb8   : > { %v1081_v26 = vor.u32 %v1234_v22, %v1078_v23  ;;  %v1153_v59 = vor.u32 %v1252_v54, %v1150_v56  ;;  %v1205_v63 = vor.u32 %v1266_v62, %v1204_v61  ;;  %v1180_v22 = vld [vmem:[%s1813_s12 + $0x128] sm:$0xf]  ;;  %v1085_v23 = vor.u32 %v1236_v21, %v1084_v20  ;;  %v1224_v56 = vld [vmem:[%s1813_s12 + $0x10] sm:$0xf0] }
  0xb9   : > { %v378_v29 = vmul.f32 %v1830_v27, %v1830_v27  ;;  %v379_v30 = vmul.f32 %v1832_v28, %v1832_v28  ;;  %784 = vmatpush.bf16.msra.mxu1 %v1161_v0  ;;  %795 = vmatpush.bf16.msra.mxu2 %v1105_v1  ;;  %v1225_v0 = vld [vmem:[%s1813_s12 + $0x1c] sm:$0xf]  ;;  %v1042_v1 = vld [vmem:[%s1813_s12 + $0x24] sm:$0xf0]  ;;  %v1133_v62 = vor.u32 %v1248_v58, %v1132_v57 }
  0xbb   : > { %v382_v31 = vadd.f32 %v379_v30, %v378_v29  ;;  %v1258_v29 = vld [vmem:[%s1813_s12 + $0x124] sm:$0xf]  ;;  %v1174_v30 = vld [vmem:[%s1813_s12 + $0x12c] sm:$0xf0] }
  0xbc   : > { %v364_v32 = vpop.xlane.xlu0 %363 }
  0xbd   : > { %v373_v33 = vmul.f32 %v1827_v24, %v364_v32  ;;  %383 = vadd.xlane.f32.xlu1 %v382_v31  ;;  %785 = vmatpush.bf16.msra.mxu1 %v1149_v12  ;;  %v1177_v31 = vor.u32 %v1258_v29, %v1174_v30  ;;  %v1028_v32 = vld [vmem:[%s1813_s12] sm:$0xf]  ;;  %v1072_v30 = vld [vmem:[%s1813_s12 + $0x50] sm:$0xf] }
  0xbe   : > { %796 = vmatpush.bf16.msra.mxu2 %v1093_v13  ;;  %v1193_v13 = vor.u32 %v1263_v10, %v1192_v9  ;;  %v418_v9 = vperm.slane %v416_v5, 0  ;;  %v426_v10 = vld [vmem:[#allocation7] sm:$0x3] }
  0xbf   : > { %v1839_v34 = vsub.f32 %v357_v3, %v373_v33  ;;  %v1841_v35 = vsub.f32 %v358_v4, %v373_v33  ;;  %v1198_v3 = vld [vmem:[%s1813_s12 + $0x15c] sm:$0xf0]  ;;  %v1223_v33 = vld [vmem:[%s1813_s12 + $0x8] sm:$0xf0]  ;;  %v428_v14 = vperm.slane %v426_v10, 0 }
  0xc0   : > { %v1201_v4 = vor.u32 %v1264_v2, %v1198_v3  ;;  %v1249_v2 = vld [vmem:[%s1813_s12 + $0xdc] sm:$0xf]  ;;  %v1045_v3 = vor.u32 %v1225_v0, %v1042_v1 }
  0xc1   : > { %v380_v36 = vmul.f32 %v1839_v34, %v1839_v34  ;;  %v381_v37 = vmul.f32 %v1841_v35, %v1841_v35  ;;  %786 = vmatpush.bf16.msra.mxu1 %v1137_v25  ;;  %v1260_v25 = vld [vmem:[%s1813_s12 + $0x130] sm:$0xf0] }
  0xc2   : > { %809 = vmatpush.bf16.msra.mxu3 %v1201_v4  ;;  %797 = vmatpush.bf16.msra.mxu2 %v1081_v26  ;;  %v1138_v4 = vld [vmem:[%s1813_s12 + $0xe4] sm:$0xf0]  ;;  %v1181_v29 = vor.u32 %v1260_v25, %v1180_v22 }
  0xc3   : > { %v385_v38 = vadd.f32 %v381_v37, %v380_v36  ;;  %v1124_v36 = vld [vmem:[%s1813_s12 + $0xc0] sm:$0xf]  ;;  %v1029_v37 = vor.u32 %v1223_v33, %v1028_v32  ;;  %v1141_v7 = vor.u32 %v1249_v2, %v1138_v4  ;;  %v1168_v32 = vld [vmem:[%s1813_s12 + $0x110] sm:$0xf] }
  0xc5   : > { %386 = vadd.xlane.f32.xlu1 %v385_v38  ;;  %v1247_v38 = vld [vmem:[%s1813_s12 + $0xc8] sm:$0xf0]  ;;  %773 = vmatpush.bf16.msra.mxu0 %v1029_v37 }
  0xc6   : > { %810 = vmatpush.bf16.msra.mxu3 %v1189_v16  ;;  %v1125_v41 = vor.u32 %v1247_v38, %v1124_v36  ;;  %798 = vmatpush.bf16.msra.mxu2 %v1069_v42  ;;  %v1126_v16 = vld [vmem:[%s1813_s12 + $0xcc] sm:$0xf0]  ;;  %v1257_v36 = vld [vmem:[%s1813_s12 + $0x118] sm:$0xf0] }
  0xc7   : > { %v1129_v19 = vor.u32 %v1246_v15, %v1126_v16  ;;  %v1169_v38 = vor.u32 %v1257_v36, %v1168_v32  ;;  %v429_v15 = vperm.slane %v426_v10, 1 }
  0xc8   : > { %787 = vmatpush.bf16.msra.mxu1 %v1125_v41  ;;  %v1156_v41 = vld [vmem:[%s1813_s12 + $0xf8] sm:$0xf] }
  0xc9   : > { %822 = vmatpush.bf16.msrb.mxu0 %v1121_v50  ;;  %v1157_v45 = vor.u32 %v1254_v43, %v1156_v41  ;;  %v1144_v50 = vld [vmem:[%s1813_s12 + $0xe0] sm:$0xf] }
  0xca   : > { %811 = vmatpush.bf16.msra.mxu3 %v1177_v31  ;;  %799 = vmatpush.bf16.msra.mxu2 %v1057_v55  ;;  %v1233_v31 = vld [vmem:[%s1813_s12 + $0x58] sm:$0xf0]  ;;  %v1036_v55 = vld [vmem:[%s1813_s12 + $0x8] sm:$0xf] }
  0xcb   : > { %v1073_v33 = vor.u32 %v1233_v31, %v1072_v30  ;;  %v1037_v61 = vor.u32 %v1224_v56, %v1036_v55 }
  0xcc   : > { %836 = vmatpush.bf16.msrb.mxu1 %v1217_v51  ;;  %v1251_v51 = vld [vmem:[%s1813_s12 + $0xe8] sm:$0xf0] }
  0xcd   : > { %823 = vmatpush.bf16.msrb.mxu0 %v1109_v60  ;;  %v1145_v54 = vor.u32 %v1251_v51, %v1144_v50 }
  0xce   : > { %812 = vmatpush.bf16.msra.mxu3 %v1165_v46  ;;  %800 = vmatpush.bf16.msra.mxu2 %v1045_v3  ;;  %v1048_v46 = vld [vmem:[%s1813_s12 + $0x20] sm:$0xf] }
  0xd0   : > { %837 = vmatpush.bf16.msrb.mxu1 %v1205_v63 }
  0xd1   : > { %824 = vmatpush.bf16.msrb.mxu0 %v1097_v8 }
  0xd2   : > { %813 = vmatpush.bf16.msra.mxu3 %v1153_v59  ;;  %801 = vmatpush.bf16.msra.mxu2 %v1033_v18 }
  0xd4   : > { %838 = vmatpush.bf16.msrb.mxu1 %v1193_v13 }
  0xd5   : > { %825 = vmatpush.bf16.msrb.mxu0 %v1085_v23 }
  0xd6   : > { %814 = vmatpush.bf16.msra.mxu3 %v1141_v7 }
  0xd8   : > { %839 = vmatpush.bf16.msrb.mxu1 %v1181_v29 }
  0xd9   : > { %826 = vmatpush.bf16.msrb.mxu0 %v1073_v33 }
  0xda   : > { %815 = vmatpush.bf16.msra.mxu3 %v1129_v19 }
  0xdc   : > { %840 = vmatpush.bf16.msrb.mxu1 %v1169_v38 }
  0xdd   : > { %827 = vmatpush.bf16.msrb.mxu0 %v1061_v44 }
  0xe0   : > { %841 = vmatpush.bf16.msrb.mxu1 %v1157_v45 }
  0xe4   : > { %842 = vmatpush.bf16.msrb.mxu1 %v1145_v54 }
  0xe8   : > { %843 = vmatpush.bf16.msrb.mxu1 %v1133_v62 }
 0x130   : > { %v384_v12 = vpop.xlane.xlu1 %383 }
 0x131   : > { %v388_v17 = vmul.f32 %v384_v12, %v1827_v24 }
 0x133   : > { %v390_v26 = vadd.f32 1e-05, %v388_v17 }
 0x135   : > { %1385 = vrsqrt.f32 %v390_v26  ;;  %vm398_vm2 = vweird.f32 %v390_v26 }
 0x138   : > { %v387_v37 = vpop.xlane.xlu1 %386 }
 0x139   : > { %v389_v42 = vmul.f32 %v387_v37, %v1827_v24  ;;  %v1049_v24 = vor.u32 %v1227_v47, %v1048_v46 }
 0x13b   : > { %v1386_v48 = vpop.eup %1385  ;;  %v391_v49 = vadd.f32 1e-05, %v389_v42  ;;  %828 = vmatpush.bf16.msrb.mxu0 %v1049_v24 }
 0x13c   : > { %v393_v52 = vmul.f32 %v1386_v48, %v390_v26  ;;  %vm399_vm1 = vweird.f32 %v1386_v48 }
 0x13d   : > { %1387 = vrsqrt.f32 %v391_v49  ;;  %vm400_vm3 = vmor %vm398_vm2, %vm399_vm1  ;;  %vm408_vm5 = vweird.f32 %v391_v49 }
 0x13e   : > { %v394_v53 = vmul.f32 %v1386_v48, %v393_v52 }
 0x13f   : > { %829 = vmatpush.bf16.msrb.mxu0 %v1037_v61 }
 0x140   : > { %v395_v59 = vmul.f32 0.5, %v394_v53 }
 0x142   : > { %v396_v60 = vsub.f32 1.5, %v395_v59 }
 0x143   : > { %v1388_v63 = vpop.eup %1387 }
 0x144   : > { %v397_v0 = vmul.f32 %v1386_v48, %v396_v60  ;;  %v403_v1 = vmul.f32 %v1388_v63, %v391_v49  ;;  %vm409_vm4 = vweird.f32 %v1388_v63 }
 0x145   : > { %vm410_vm6 = vmor %vm408_vm5, %vm409_vm4 }
 0x146   : > { %v404_v2 = vmul.f32 %v1388_v63, %v403_v1  ;;  %v401_v3 = vsel %vm400_vm3, %v1386_v48, %v397_v0 }
 0x147   : > { %v412_v7 = vmul.f32 %v401_v3, %v1830_v27  ;;  %v413_v8 = vmul.f32 %v401_v3, %v1832_v28 }
 0x148   : > { %v405_v4 = vmul.f32 0.5, %v404_v2 }
 0x149   : > { %v422_v18 = vmul.f32 %v418_v9, %v412_v7  ;;  %v423_v19 = vmul.f32 %v419_v11, %v413_v8 }
 0x14a   : > { %v406_v6 = vsub.f32 1.5, %v405_v4 }
 0x14b   : > { %v432_v21 = vadd.f32 %v428_v14, %v422_v18  ;;  %v433_v22 = vadd.f32 %v429_v15, %v423_v19 }
 0x14c   : > { %v407_v12 = vmul.f32 %v1388_v63, %v406_v6 }
 0x14e   : > { %v411_v13 = vsel %vm410_vm6, %v1388_v63, %v407_v12 }
 0x14f   : > { %v414_v16 = vmul.f32 %v411_v13, %v1839_v34  ;;  %v415_v17 = vmul.f32 %v411_v13, %v1841_v35  ;;  %v502_v34 = vld [vmem:[%s317_s28] sm:$0x7] }
 0x150   : > { %v504_v30 = vperm.slane %v502_v34, 0  ;;  %v505_v31 = vperm.slane %v502_v34, 1  ;;  %v506_v43 = vperm.slane %v502_v34, 2 }
 0x151   : > { %v424_v20 = vmul.f32 %v418_v9, %v414_v16  ;;  %v425_v27 = vmul.f32 %v419_v11, %v415_v17 }
 0x153   : > { %v434_v28 = vadd.f32 %v428_v14, %v424_v20  ;;  %v435_v23 = vadd.f32 %v429_v15, %v425_v27 }
 0x155   : > { %v436_v25 = vpack.c.bf16 %v434_v28, %v432_v21  ;;  %v437_v26 = vpack.c.bf16 %v435_v23, %v433_v22 }
 0x157   : > { %774 = vmatmul.bf16.vlgmr.msra.gmra.mxu0 %v436_v25  ;;  %788 = vmatmul.bf16.vlgmr.msra.gmra.mxu1 %v437_v26 }
 0x158   : > { %802 = vmatmul.bf16.vlgmr.msra.gmra.mxu2 %v436_v25  ;;  %816 = vmatmul.bf16.vlgmr.msra.gmra.mxu3 %v437_v26 }
 0x167   : > { %830 = vmatmul.bf16.vlgmr.msrb.gmra.mxu0 %v436_v25  ;;  %844 = vmatmul.bf16.vlgmr.msrb.gmra.mxu1 %v437_v26 }
 0x1d4   : > { %v775_v35 = vpop.f32.mrf.mxu0  ;;  %v789_v29 = vpop.f32.mrf.mxu1 }
 0x1d5   : > { %v776_v32 = vadd.f32 %v775_v35, %v504_v30 }
 0x1d7   : > { %v790_v40 = vadd.f32 %v789_v29, %v776_v32 }
 0x1db   : > { %v803_v33 = vpop.f32.mrf.mxu2  ;;  %v817_v36 = vpop.f32.mrf.mxu3 }
 0x1dc   : > { %v804_v37 = vadd.f32 %v803_v33, %v505_v31  ;;  %v777_v38 = vpop.f32.mrf.mxu0  ;;  %v791_v39 = vpop.f32.mrf.mxu1 }
 0x1dd   : > { %v778_v44 = vadd.f32 %v777_v38, %v504_v30 }
 0x1de   : > { %v818_v41 = vadd.f32 %v817_v36, %v804_v37 }
 0x1df   : > { %v792_v51 = vadd.f32 %v791_v39, %v778_v44 }
 0x1e0   : > { %v850_v42 = vpack.c.bf16 %v818_v41, %v790_v40 }
 0x1e2   : > { %854 = vst [vmem:[%s349_s6] sm:$0xff] %v850_v42 }
 0x1e3   : > { %v805_v45 = vpop.f32.mrf.mxu2  ;;  %v819_v49 = vpop.f32.mrf.mxu3 }
 0x1e4   : > { %v806_v46 = vadd.f32 %v805_v45, %v505_v31  ;;  %v831_v47 = vpop.f32.mrf.mxu0  ;;  %v845_v48 = vpop.f32.mrf.mxu1 }
 0x1e5   : > { %v832_v50 = vadd.f32 %v831_v47, %v506_v43 }
 0x1e6   : > { %v820_v52 = vadd.f32 %v819_v49, %v806_v46 }
 0x1e7   : > { %v846_v53 = vadd.f32 %v845_v48, %v832_v50 }
 0x1e8   : > { %v852_v24 = vpack.c.bf16 %v820_v52, %v792_v51 }
 0x1e9   : > { %v851_v54 = vpack.c.bf16 %v846_v53, %v846_v53 }
 0x1ea   : > { %856 = vst [vmem:[%s349_s6 + $0xc] sm:$0xff] %v852_v24 }
 0x1eb   : > { %855 = vst [vmem:[%s349_s6 + $0x8] sm:$0xf] %v851_v54 }
 0x1ec   : > { %v833_v55 = vpop.f32.mrf.mxu0  ;;  %v847_v57 = vpop.f32.mrf.mxu1 }
 0x1ed   : > { %v834_v56 = vadd.f32 %v833_v55, %v506_v43 }
 0x1ef   : > { %v848_v58 = vadd.f32 %v847_v57, %v834_v56 }
 0x1f1   : > { %v853_v59 = vpack.c.bf16 %v848_v58, %v848_v58 }
 0x1f3   : > { %857 = vst [vmem:[%s349_s6 + $0x14] sm:$0xf] %v853_v59 }
 0x1f4   : > { %1566 = shalt.err (!%p1563_p1)
}
 0x1f5   : > { %s1640_s7 = smov 192   ;;  %s1641_s0 = smov 384  }
 0x1f6   : > { %s1642_s3 = smov 12  }
 0x1f7   : > { %1292 = dma.vmem_to_hbm [thread:$0]  (%p1725_p8), %s875_s10, 384, %s877_s18, %s859_s21, %s1640_s7, %s1641_s0, %s1642_s3  }
 0x1f8 PF: > { %s2012_s23 = sld [smem:[#allocation16_spill]]  ;;  %p1312_p2 = pnand %p1020_p13, %p1729_p9 }
 0x1f9   : > { %s2014_s12 = sld [smem:[#allocation17_spill]] }
 0x1fa   : > { %p1313_p4 = pneg %p1312_p2 }
 0x1fe   : > { %s891_s24 = sand.u32 1, %s2012_s23  }
 0x1ff   : > { %s892_s28 = scalar_lea.sflag [#allocation4], %s891_s24 }
 0x200   : > { %1604 = dma.done.wait (%p1313_p4), %s892_s28, 384  }
 0x201   : > { %1606 = vsyncadd (%p1313_p4), %s892_s28, 4294966912  ;;  %s23_s23 = sadd.s32 1, %s2014_s12   ;;  %s2015_s13 = sld [smem:[#allocation20_spill]] }
 0x202   : > { %p20_p6 = scmp.ge.s32.totalorder %s23_s23, 4   ;;  %s2016_s29 = sld [smem:[#allocation19_spill]] }
 0x203   : > { %s2017_s18 = smov %s1613_s19  ;;  %s2018_s19 = smov %s1617_s20 }
 0x204   : > { %s2020_s21 = smov %s1625_s22  ;;  %22 = sbr.rel (!%p20_p6) target bundleno = 12 (0xc), region = 110 }
 0x207   : > { %s2019_s20 = smov %s2015_s13 }
 0x208   : > { %s2021_s22 = smov %s2016_s29 }
 0x209   :  { %898 = vsyncpa [#allocation3], 1 }
 0x20a   :  { %900 = vsyncpa [#allocation3 + $0x1], 1 }
 0x20b   :  { %901 = vsyncpa [#allocation6], 1 }
 0x20c   :  { %902 = vsyncpa [#allocation9], 1 }
 0x20d   :  { %904 = vsyncpa [#allocation9 + $0x1], 1 }
 0x20e   :  { %905 = vsyncpa [#allocation4], 1 }
 0x20f   :  { %907 = vsyncpa [#allocation4 + $0x1], 1 }

</bundles_post_ra>
